<compile_context>
chip_gen: v7x
topology: tpu7x:2x2x1
jax: 0.10.0
libtpu: 0.0.40
codegen_flags: <defaults>
</compile_context>

<pallas_src>
import jax
import jax.numpy as jnp
from jax.experimental import pallas as pl
from jax.experimental.pallas import tpu as pltpu

C_IN = 308
C_OUT = 1232

LANE = 128
SUBLANE = 8


def conv1x1_kernel(x_ref, w_ref, b_ref, o_ref):
    # x_ref: (TM, C_IN_P) bf16, w_ref: (C_IN_P, C_OUT_P) bf16 (VMEM-resident),
    # b_ref: (1, C_OUT_P) f32,  o_ref: (TM, C_OUT_P) f32
    acc = jnp.dot(x_ref[...], w_ref[...], preferred_element_type=jnp.float32)
    o_ref[...] = (acc + b_ref[...]).astype(o_ref.dtype)


def _round_up(x, k):
    return (x + k - 1) // k * k


def conv2d_1x1(x_nchw, weight, bias, *, tm_max=1024):
    """1x1 conv, stride 1, no padding.

    x_nchw: (N, C_in, H, W) float32
    weight: (C_out, C_in, 1, 1) float32
    bias:   (C_out,) float32
    returns (N, C_out, H, W) float32
    """
    n, c_in, h, w = x_nchw.shape
    c_out = weight.shape[0]
    assert c_in == weight.shape[1]
    assert weight.shape[2] == 1 and weight.shape[3] == 1

    # ---- flatten NCHW -> (M, C_in), channels-last for lane density ----------
    if h == 1 and w == 1:
        x2d = x_nchw.reshape(n, c_in)                 # pure reshape, no transpose
    else:
        x2d = jnp.transpose(x_nchw, (0, 2, 3, 1)).reshape(n * h * w, c_in)
    m = n * h * w

    # ---- pad to lane/sublane multiples, bf16 cast (kernel is mem-bound) -----
    c_in_p = _round_up(c_in, LANE)                    # 308 -> 384
    c_out_p = _round_up(c_out, LANE)                  # 1232 -> 1280

    tm = min(tm_max, _round_up(m, SUBLANE))           # TM, capped for v7x VMEM
    m_p = _round_up(m, tm)

    x2d = jnp.pad(x2d, ((0, m_p - m), (0, c_in_p - c_in))).astype(jnp.bfloat16)
    w2d = jnp.pad(weight.reshape(c_out, c_in).T,
                  ((0, c_in_p - c_in), (0, c_out_p - c_out))).astype(jnp.bfloat16)
    b2d = jnp.pad(bias, (0, c_out_p - c_out)).reshape(1, c_out_p).astype(jnp.float32)

    grid = (m_p // tm,)

    out2d = pl.pallas_call(
        conv1x1_kernel,
        out_shape=jax.ShapeDtypeStruct((m_p, c_out_p), jnp.float32),
        grid=grid,
        in_specs=[
            pl.BlockSpec((tm, c_in_p), lambda i: (i, 0)),        # activation tile
            pl.BlockSpec((c_in_p, c_out_p), lambda i: (0, 0)),   # weight: VMEM-resident
            pl.BlockSpec((1, c_out_p), lambda i: (0, 0)),        # bias: VMEM-resident
        ],
        out_specs=pl.BlockSpec((tm, c_out_p), lambda i: (i, 0)),
        compiler_params=pltpu.CompilerParams(
            dimension_semantics=("parallel",),     # megacore sharding on v7x
            vmem_limit_bytes=64 << 20,
        ),
        cost_estimate=pl.CostEstimate(
            flops=2 * m * c_in * c_out,
            transcendentals=0,
            bytes_accessed=(x2d.size * 2 + w2d.size * 2 + b2d.size * 4
                            + m_p * c_out_p * 4),
        ),
    )(x2d, w2d, b2d)

    out2d = out2d[:m, :c_out].astype(x_nchw.dtype)

    # ---- back to NCHW --------------------------------------------------------
    if h == 1 and w == 1:
        return out2d.reshape(n, c_out, 1, 1)
    return jnp.transpose(out2d.reshape(n, h, w, c_out), (0, 3, 1, 2))


def reference(x_nchw, weight, bias):
    # Pure-JAX f32 reference of the 1x1 conv.
    n, c_in, h, w = x_nchw.shape
    c_out = weight.shape[0]
    x2d = jnp.transpose(x_nchw, (0, 2, 3, 1)).reshape(-1, c_in)
    y2d = x2d @ weight.reshape(c_out, c_in).T + bias[None, :]
    return jnp.transpose(y2d.reshape(n, h, w, c_out), (0, 3, 1, 2))


if __name__ == "__main__":
    key = jax.random.PRNGKey(0)
    kx, kw, kb, kx2 = jax.random.split(key, 4)

    # Deterministic synthetic parameters (PyTorch-like uniform init scale).
    fan_in = C_IN * 1 * 1
    bound = 1.0 / (fan_in ** 0.5)
    weight = jax.random.uniform(kw, (C_OUT, C_IN, 1, 1), dtype=jnp.float32,
                                minval=-bound, maxval=bound)
    bias = jax.random.uniform(kb, (C_OUT,), dtype=jnp.float32,
                              minval=-bound, maxval=bound)

    # Shape implied by the module: (1, 308, 1, 1).
    x = jax.random.normal(kx, (1, C_IN, 1, 1), dtype=jnp.float32)
    y = jax.block_until_ready(conv2d_1x1(x, weight, bias))
    y_ref = reference(x, weight, bias)
    assert y.shape == (1, C_OUT, 1, 1), y.shape
    # bf16 weights/activations (f32 accumulate) -> loosened tolerance vs f32 ref.
    assert jnp.allclose(y, y_ref, atol=5e-2, rtol=5e-2), float(
        jnp.max(jnp.abs(y - y_ref)))

    # Exercise the tiled (M > 1) path too, to show the kernel scales.
    x_big = jax.random.normal(kx2, (4, C_IN, 7, 7), dtype=jnp.float32)
    y_big = jax.block_until_ready(conv2d_1x1(x_big, weight, bias))
    y_big_ref = reference(x_big, weight, bias)
    assert y_big.shape == (4, C_OUT, 7, 7), y_big.shape
    assert jnp.allclose(y_big, y_big_ref, atol=5e-2, rtol=5e-2), float(
        jnp.max(jnp.abs(y_big - y_big_ref)))

    print("KERNEL_OK")
</pallas_src>

<mosaic_0001>
module attributes {stable_mosaic.version = 11 : i64} {
  func.func @conv1x1_kernel(%arg0: i32, %arg1: memref<8x384xbf16, #tpu.memory_space<vmem>>, %arg2: memref<384x1280xbf16, #tpu.memory_space<vmem>>, %arg3: memref<1x1280xf32, #tpu.memory_space<vmem>>, %arg4: memref<8x1280xf32, #tpu.memory_space<vmem>>) attributes {dimension_semantics = [#tpu.dimension_semantics<parallel>], iteration_bounds = array<i64: 1>, scalar_prefetch = 0 : i64, scratch_operands = 0 : i64, tpu.core_type = #tpu.core_type<tc>, window_params = [{transform_indices = @transform_0, window_bounds = array<i64: 8, 384>}, {pipeline_mode = #tpu.pipeline_mode<synchronous>, transform_indices = @transform_1, window_bounds = array<i64: 384, 1280>}, {pipeline_mode = #tpu.pipeline_mode<synchronous>, transform_indices = @transform_2, window_bounds = array<i64: 1, 1280>}, {transform_indices = @transform_3, window_bounds = array<i64: 8, 1280>}]} {
    %c0 = arith.constant 0 : index
    %c0_0 = arith.constant 0 : index
    %0 = vector.load %arg1[%c0, %c0_0] : memref<8x384xbf16, #tpu.memory_space<vmem>>, vector<8x384xbf16>
    %c0_1 = arith.constant 0 : index
    %c0_2 = arith.constant 0 : index
    %1 = vector.load %arg2[%c0_1, %c0_2] : memref<384x1280xbf16, #tpu.memory_space<vmem>>, vector<384x1280xbf16>
    %cst = arith.constant dense<0.000000e+00> : vector<8x1280xf32>
    %2 = tpu.matmul %0, %1, %cst {dimension_numbers = #tpu.dot_dimension_numbers<[1], [0], [0], [1], [0, 0, 1, 1], [], []>} : vector<8x384xbf16>, vector<384x1280xbf16>, vector<8x1280xf32> -> vector<8x1280xf32>
    %c0_3 = arith.constant 0 : index
    %c0_4 = arith.constant 0 : index
    %3 = vector.load %arg3[%c0_3, %c0_4] : memref<1x1280xf32, #tpu.memory_space<vmem>>, vector<1x1280xf32>
    %4 = vector.broadcast %3 : vector<1x1280xf32> to vector<8x1280xf32>
    %5 = arith.addf %2, %4 : vector<8x1280xf32>
    %c0_5 = arith.constant 0 : index
    %c0_6 = arith.constant 0 : index
    %6 = vector.load %arg4[%c0_5, %c0_6] : memref<8x1280xf32, #tpu.memory_space<vmem>>, vector<8x1280xf32>
    tpu.vector_store %arg4[%c0_5, %c0_6], %5 {strides = array<i32>} : memref<8x1280xf32, #tpu.memory_space<vmem>>, vector<8x1280xf32>,
    return
  }
  func.func @transform_0(%arg0: i32) -> (i32, i32) {
    %c0_i32 = arith.constant 0 : i32
    %c0_i32_0 = arith.constant 0 : i32
    return %arg0, %c0_i32 : i32, i32
  }
  func.func @transform_1(%arg0: i32) -> (i32, i32) {
    %c0_i32 = arith.constant 0 : i32
    %c0_i32_0 = arith.constant 0 : i32
    %c0_i32_1 = arith.constant 0 : i32
    return %c0_i32, %c0_i32_0 : i32, i32
  }
  func.func @transform_2(%arg0: i32) -> (i32, i32) {
    %c0_i32 = arith.constant 0 : i32
    %c0_i32_0 = arith.constant 0 : i32
    %c0_i32_1 = arith.constant 0 : i32
    return %c0_i32, %c0_i32_0 : i32, i32
  }
  func.func @transform_3(%arg0: i32) -> (i32, i32) {
    %c0_i32 = arith.constant 0 : i32
    %c0_i32_0 = arith.constant 0 : i32
    return %arg0, %c0_i32 : i32, i32
  }
}

</mosaic_0001>

<bundles_post_ra>
// kernel: tpu_custom_call.1
= control target key start
LH: loop header
LB: loop body
LE: loop exit
PB: predicated region body
PF: predicated region fallthrough
CT: control target
= control target key end

     0   :  { %8 = vsyncpa [#allocation3], 0  ;;  %s2831_s0 = inlined_call_operand.hbm [shape: bf16[8,384], index: 0, kind: input, shape index: {}]   ;;  %s2832_s1 = inlined_call_operand.hbm [shape: bf16[384,1280], index: 1, kind: input, shape index: {}]   ;;  %s2833_s2 = inlined_call_operand.hbm [shape: f32[1,1280], index: 2, kind: input, shape index: {}]   ;;  %s2834_s3 = inlined_call_operand.hbm [shape: f32[8,1280], index: 3, kind: output, shape index: {}]  }
   0x1   :  { %9 = vsyncpa [#allocation6], 0 }
   0x2   :  { %10 = vsyncpa [#allocation4], 0  ;;  %s2732_s12 = smov [#allocation5]   ;;  %s2638_s16 = scalar_lea.hbm %s2832_s1, 30720 }
   0x3   :  { %s26_s13 = sshll.u32 %s2732_s12, 4  ;;  %p2639_p0 = scmp.ne.s32.totalorder %s2832_s1, %s2638_s16  ;;  %s27_s13 = int_to_ptr.vmem [resolvable:$true] %s26_s13 }
   0x4   :  { %p2642_p1 = scmp.lt.u32.totalorder %s2638_s16, %s2832_s1 }
   0x6   :  { %p2644_p2 = pnand %p2642_p1, %p2639_p0 }
   0x8   :  { %2647 = shalt.err (!%p2644_p2)
}
   0x9   :  { %s2648_s21 = scalar_lea.vmem %s27_s13, 30720  ;;  %p2653_p4 = scmp.lt.s32.totalorder %s27_s13, %s27_s13 }
   0xa   :  { %p2649_p3 = scmp.ne.s32.totalorder %s27_s13, %s2648_s21  ;;  %p2654_p5 = scmp.lt.s32.totalorder %s2648_s21, %s2648_s21 }
   0xc   :  { %p2655_p6 = por %p2654_p5, %p2653_p4 }
   0xe   :  { %p2656_p7 = pnand %p2655_p6, %p2649_p3 }
  0x10   :  { %2659 = shalt.err (!%p2656_p7)
}
  0x11   :  { %s2733_s22 = smov 640   ;;  %s2734_s23 = smov 40  }
  0x12   :  { %32 = dma.hbm_to_vmem [thread:$0]  %s2832_s1, 30720, %s27_s13, [#allocation6], %s2733_s22, %s2733_s22, %s2734_s23  }
  0x13   :  { %s2735_s26 = smov [#allocation2]   ;;  %s2736_s28 = smov [#allocation7]  }
  0x14   :  { %s17_s27 = sshll.u32 %s2735_s26, 4  ;;  %s39_s29 = sshll.u32 %s2736_s28, 4  ;;  %s18_s27 = int_to_ptr.vmem [resolvable:$true] %s17_s27  ;;  %s40_s29 = int_to_ptr.vmem [resolvable:$true] %s39_s29 }
  0x15   :  { %s2660_s5 = scalar_lea.hbm %s2831_s0, 192 }
  0x16   :  { %p2661_p8 = scmp.ne.s32.totalorder %s2831_s0, %s2660_s5  ;;  %p2664_p9 = scmp.lt.u32.totalorder %s2660_s5, %s2831_s0 }
  0x18   :  { %p2666_p10 = pnand %p2664_p9, %p2661_p8 }
  0x1a   :  { %2669 = shalt.err (!%p2666_p10)
}
  0x1b   :  { %s2670_s1 = scalar_lea.vmem %s18_s27, 192  ;;  %p2675_p12 = scmp.lt.s32.totalorder %s18_s27, %s18_s27 }
  0x1c   :  { %p2671_p11 = scmp.ne.s32.totalorder %s18_s27, %s2670_s1  ;;  %p2676_p13 = scmp.lt.s32.totalorder %s2670_s1, %s2670_s1 }
  0x1e   :  { %p2677_p0 = por %p2676_p13, %p2675_p12 }
  0x20   :  { %p2678_p1 = pnand %p2677_p0, %p2671_p11 }
  0x22   :  { %2681 = shalt.err (!%p2678_p1)
}
  0x23   :  { %20 = dma.hbm_to_vmem [thread:$0]  %s2831_s0, 192, %s18_s27, [#allocation3]  }
  0x24   :  { %s2682_s14 = scalar_lea.hbm %s2833_s2, 160 }
  0x25   :  { %p2683_p2 = scmp.ne.s32.totalorder %s2833_s2, %s2682_s14  ;;  %p2686_p3 = scmp.lt.u32.totalorder %s2682_s14, %s2833_s2 }
  0x27   :  { %p2688_p4 = pnand %p2686_p3, %p2683_p2 }
  0x29   :  { %2691 = shalt.err (!%p2688_p4)
}
  0x2a   :  { %s2692_s19 = scalar_lea.vmem %s40_s29, 160  ;;  %p2697_p6 = scmp.lt.s32.totalorder %s40_s29, %s40_s29 }
  0x2b   :  { %p2693_p5 = scmp.ne.s32.totalorder %s40_s29, %s2692_s19  ;;  %p2698_p7 = scmp.lt.s32.totalorder %s2692_s19, %s2692_s19 }
  0x2d   :  { %p2699_p8 = por %p2698_p7, %p2697_p6 }
  0x2f   :  { %p2700_p9 = pnand %p2699_p8, %p2693_p5 }
  0x31   :  { %2703 = shalt.err (!%p2700_p9)
}
  0x32   :  { %42 = dma.hbm_to_vmem [thread:$0]  %s2833_s2, 160, %s40_s29, [#allocation6]  }
  0x33   :  { %2726 = dma.done.wait [#allocation3], 192  }
  0x34   :  { %2727 = vsyncadd [#allocation3], 4294967104 }
  0x35   :  { %2728 = dma.done.wait [#allocation6], 30880  }
  0x36   :  { %2729 = vsyncadd [#allocation6], 4294936416  ;;  %v2737_v0 = vmov 0   ;;  %v2274_v1 = vld [vmem:[#allocation5 + $0x4] ss:$40 sps:$4 sm:$0xff]   ;;  %v53_v49 = vld [vmem:[#allocation2] sm:$0xff] }
  0x37   :  { %1633 = vmatprep.mubr.bf16.mxu0 %v2737_v0  ;;  %v2276_v2 = vld [vmem:[#allocation5 + $0x504] ss:$40 sps:$4 sm:$0xff]   ;;  %1560 = vmatprep.subr.bf16.mxu1 %v2274_v1  ;;  %v2278_v3 = vld [vmem:[#allocation5] ss:$40 sps:$4 sm:$0xff]   ;;  %v2280_v5 = vld [vmem:[#allocation5 + $0x54] ss:$40 sps:$4 sm:$0xff]   ;;  %v2799_v52 = vcombine.high %v53_v49, %v53_v49 }
  0x38   :  { %v2279_v4 = vld [vmem:[#allocation5 + $0x500] ss:$40 sps:$4 sm:$0xff]   ;;  %1601 = vmatprep.subr.bf16.mxu0 %v2276_v2  ;;  %1561 = vmatpush1.bf16.msra.mxu1 %v2278_v3  ;;  %v2282_v6 = vld [vmem:[#allocation5 + $0x554] ss:$40 sps:$4 sm:$0xff]   ;;  %v2284_v7 = vld [vmem:[#allocation5 + $0x50] ss:$40 sps:$4 sm:$0xff]  }
  0x39   :  { %1602 = vmatpush1.bf16.msra.mxu0 %v2279_v4  ;;  %1562 = vmatprep.subr.bf16.mxu1 %v2280_v5  ;;  %v2285_v8 = vld [vmem:[#allocation5 + $0x550] ss:$40 sps:$4 sm:$0xff]   ;;  %v2286_v9 = vld [vmem:[#allocation5 + $0xa4] ss:$40 sps:$4 sm:$0xff]   ;;  %v2290_v11 = vld [vmem:[#allocation5 + $0xa0] ss:$40 sps:$4 sm:$0xff]  }
  0x3a   :  { %1603 = vmatprep.subr.bf16.mxu0 %v2282_v6  ;;  %v2288_v10 = vld [vmem:[#allocation5 + $0x5a4] ss:$40 sps:$4 sm:$0xff]   ;;  %v2291_v12 = vld [vmem:[#allocation5 + $0x5a0] ss:$40 sps:$4 sm:$0xff]   ;;  %v2292_v13 = vld [vmem:[#allocation5 + $0xf4] ss:$40 sps:$4 sm:$0xff]   ;;  %1592 = vmatprep.mubr.bf16.mxu1 %v2799_v52 }
  0x3b   :  { %v2294_v14 = vld [vmem:[#allocation5 + $0x5f4] ss:$40 sps:$4 sm:$0xff]   ;;  %v2296_v15 = vld [vmem:[#allocation5 + $0xf0] ss:$40 sps:$4 sm:$0xff]   ;;  %v2298_v17 = vld [vmem:[#allocation5 + $0x144] ss:$40 sps:$4 sm:$0xff]  }
  0x3c   :  { %1563 = vmatpush1.bf16.msra.mxu1 %v2284_v7  ;;  %v2297_v16 = vld [vmem:[#allocation5 + $0x5f0] ss:$40 sps:$4 sm:$0xff]   ;;  %v2300_v18 = vld [vmem:[#allocation5 + $0x644] ss:$40 sps:$4 sm:$0xff]   ;;  %v2302_v19 = vld [vmem:[#allocation5 + $0x140] ss:$40 sps:$4 sm:$0xff]   ;;  %v2803_v7 = vcombine.low %v53_v49, %v53_v49 }
  0x3d   :  { %1604 = vmatpush1.bf16.msra.mxu0 %v2285_v8  ;;  %1564 = vmatprep.subr.bf16.mxu1 %v2286_v9  ;;  %v2303_v20 = vld [vmem:[#allocation5 + $0x640] ss:$40 sps:$4 sm:$0xff]   ;;  %v2304_v21 = vld [vmem:[#allocation5 + $0x194] ss:$40 sps:$4 sm:$0xff]   ;;  %v2308_v23 = vld [vmem:[#allocation5 + $0x190] ss:$40 sps:$4 sm:$0xff]  }
  0x3e   :  { %1605 = vmatprep.subr.bf16.mxu0 %v2288_v10  ;;  %v2306_v22 = vld [vmem:[#allocation5 + $0x694] ss:$40 sps:$4 sm:$0xff]   ;;  %v2309_v24 = vld [vmem:[#allocation5 + $0x690] ss:$40 sps:$4 sm:$0xff]   ;;  %v2310_v25 = vld [vmem:[#allocation5 + $0x1e4] ss:$40 sps:$4 sm:$0xff]  }
  0x3f   :  { %v2312_v26 = vld [vmem:[#allocation5 + $0x6e4] ss:$40 sps:$4 sm:$0xff]   ;;  %v2314_v27 = vld [vmem:[#allocation5 + $0x1e0] ss:$40 sps:$4 sm:$0xff]   ;;  %v2316_v29 = vld [vmem:[#allocation5 + $0x234] ss:$40 sps:$4 sm:$0xff]  }
  0x40   :  { %1565 = vmatpush1.bf16.msra.mxu1 %v2290_v11  ;;  %v2315_v28 = vld [vmem:[#allocation5 + $0x6e0] ss:$40 sps:$4 sm:$0xff]   ;;  %v2318_v30 = vld [vmem:[#allocation5 + $0x734] ss:$40 sps:$4 sm:$0xff]   ;;  %v2320_v31 = vld [vmem:[#allocation5 + $0x230] ss:$40 sps:$4 sm:$0xff]  }
  0x41   :  { %1606 = vmatpush1.bf16.msra.mxu0 %v2291_v12  ;;  %1566 = vmatprep.subr.bf16.mxu1 %v2292_v13  ;;  %v2321_v32 = vld [vmem:[#allocation5 + $0x730] ss:$40 sps:$4 sm:$0xff]   ;;  %v2322_v33 = vld [vmem:[#allocation5 + $0x284] ss:$40 sps:$4 sm:$0xff]   ;;  %v2326_v34 = vld [vmem:[#allocation5 + $0x14] ss:$40 sps:$4 sm:$0xff]  }
  0x42   :  { %1607 = vmatprep.subr.bf16.mxu0 %v2294_v14  ;;  %v2324_v35 = vld [vmem:[#allocation5 + $0x10] ss:$40 sps:$4 sm:$0xff]   ;;  %v2796_v36 = vld [vmem:[#allocation2 + $0x8] ss:$0 sps:$4 sm:$0xff]   ;;  %v2327_v37 = vld [vmem:[#allocation5 + $0x280] ss:$40 sps:$4 sm:$0xff]  }
  0x43   :  { %v2329_v38 = vld [vmem:[#allocation5 + $0x2d4] ss:$40 sps:$4 sm:$0xff]   ;;  %v2333_v39 = vld [vmem:[#allocation5 + $0x64] ss:$40 sps:$4 sm:$0xff]   ;;  %v2331_v40 = vld [vmem:[#allocation5 + $0x60] ss:$40 sps:$4 sm:$0xff]  }
  0x44   :  { %1567 = vmatpush1.bf16.msra.mxu1 %v2296_v15  ;;  %v2334_v41 = vld [vmem:[#allocation5 + $0x2d0] ss:$40 sps:$4 sm:$0xff]   ;;  %v2335_v42 = vld [vmem:[#allocation5 + $0x324] ss:$40 sps:$4 sm:$0xff]   ;;  %v2339_v43 = vld [vmem:[#allocation5 + $0xb4] ss:$40 sps:$4 sm:$0xff]  }
  0x45   :  { %1608 = vmatpush1.bf16.msra.mxu0 %v2297_v16  ;;  %1568 = vmatprep.subr.bf16.mxu1 %v2298_v17  ;;  %v2337_v44 = vld [vmem:[#allocation5 + $0xb0] ss:$40 sps:$4 sm:$0xff]   ;;  %v2340_v45 = vld [vmem:[#allocation5 + $0x320] ss:$40 sps:$4 sm:$0xff]   ;;  %v2341_v46 = vld [vmem:[#allocation5 + $0x374] ss:$40 sps:$4 sm:$0xff]  }
  0x46   :  { %1609 = vmatprep.subr.bf16.mxu0 %v2300_v18  ;;  %v2345_v47 = vld [vmem:[#allocation5 + $0x104] ss:$40 sps:$4 sm:$0xff]   ;;  %v2343_v48 = vld [vmem:[#allocation5 + $0x100] ss:$40 sps:$4 sm:$0xff]   ;;  %v2346_v50 = vld [vmem:[#allocation5 + $0x370] ss:$40 sps:$4 sm:$0xff]  }
  0x47   :  { %v2347_v51 = vld [vmem:[#allocation5 + $0x3c4] ss:$40 sps:$4 sm:$0xff]   ;;  %v2351_v53 = vld [vmem:[#allocation5 + $0x154] ss:$40 sps:$4 sm:$0xff]   ;;  %v2349_v54 = vld [vmem:[#allocation5 + $0x150] ss:$40 sps:$4 sm:$0xff]  }
  0x48   :  { %1569 = vmatpush1.bf16.msra.mxu1 %v2302_v19  ;;  %v2352_v55 = vld [vmem:[#allocation5 + $0x3c0] ss:$40 sps:$4 sm:$0xff]   ;;  %v2353_v56 = vld [vmem:[#allocation5 + $0x414] ss:$40 sps:$4 sm:$0xff]   ;;  %v2357_v57 = vld [vmem:[#allocation5 + $0x1a4] ss:$40 sps:$4 sm:$0xff]  }
  0x49   :  { %1610 = vmatpush1.bf16.msra.mxu0 %v2303_v20  ;;  %1570 = vmatprep.subr.bf16.mxu1 %v2304_v21  ;;  %v2355_v58 = vld [vmem:[#allocation5 + $0x1a0] ss:$40 sps:$4 sm:$0xff]   ;;  %v2358_v59 = vld [vmem:[#allocation5 + $0x410] ss:$40 sps:$4 sm:$0xff]   ;;  %v2359_v60 = vld [vmem:[#allocation5 + $0x464] ss:$40 sps:$4 sm:$0xff]  }
  0x4a   :  { %1611 = vmatprep.subr.bf16.mxu0 %v2306_v22  ;;  %v2363_v61 = vld [vmem:[#allocation5 + $0x1f4] ss:$40 sps:$4 sm:$0xff]   ;;  %v2361_v62 = vld [vmem:[#allocation5 + $0x1f0] ss:$40 sps:$4 sm:$0xff]   ;;  %v2364_v63 = vld [vmem:[#allocation5 + $0x460] ss:$40 sps:$4 sm:$0xff]  }
  0x4b   :  { %v2365_v1 = vld [vmem:[#allocation5 + $0x4b4] ss:$40 sps:$4 sm:$0xff]   ;;  %v2369_v2 = vld [vmem:[#allocation5 + $0x244] ss:$40 sps:$4 sm:$0xff]   ;;  %v2367_v3 = vld [vmem:[#allocation5 + $0x240] ss:$40 sps:$4 sm:$0xff]  }
  0x4c   :  { %1571 = vmatpush1.bf16.msra.mxu1 %v2308_v23  ;;  %v2370_v4 = vld [vmem:[#allocation5 + $0x4b0] ss:$40 sps:$4 sm:$0xff]   ;;  %v2375_v5 = vld [vmem:[#allocation5 + $0xc] ss:$40 sps:$4 sm:$0xff]   ;;  %v2381_v10 = vld [vmem:[#allocation5 + $0x5c] ss:$40 sps:$4 sm:$0xff]  }
  0x4d   :  { %1612 = vmatpush1.bf16.msra.mxu0 %v2309_v24  ;;  %1572 = vmatprep.subr.bf16.mxu1 %v2310_v25  ;;  %v2378_v6 = vld [vmem:[#allocation5 + $0x294] ss:$40 sps:$4 sm:$0xff]   ;;  %v2373_v8 = vld [vmem:[#allocation5 + $0x8] ss:$40 sps:$4 sm:$0xff]   ;;  %v2384_v11 = vld [vmem:[#allocation5 + $0x2e4] ss:$40 sps:$4 sm:$0xff]  }
  0x4e   :  { %1613 = vmatprep.subr.bf16.mxu0 %v2312_v26  ;;  %v2376_v9 = vld [vmem:[#allocation5 + $0x290] ss:$40 sps:$4 sm:$0xff]   ;;  %v2382_v13 = vld [vmem:[#allocation5 + $0x2e0] ss:$40 sps:$4 sm:$0xff]   ;;  %v2387_v14 = vld [vmem:[#allocation5 + $0xac] ss:$40 sps:$4 sm:$0xff]  }
  0x4f   :  { %v2379_v12 = vld [vmem:[#allocation5 + $0x58] ss:$40 sps:$4 sm:$0xff]   ;;  %v2390_v15 = vld [vmem:[#allocation5 + $0x334] ss:$40 sps:$4 sm:$0xff]   ;;  %v2385_v16 = vld [vmem:[#allocation5 + $0xa8] ss:$40 sps:$4 sm:$0xff]  }
  0x50   :  { %1573 = vmatpush1.bf16.msra.mxu1 %v2314_v27  ;;  %v2388_v17 = vld [vmem:[#allocation5 + $0x330] ss:$40 sps:$4 sm:$0xff]   ;;  %v2393_v18 = vld [vmem:[#allocation5 + $0xfc] ss:$40 sps:$4 sm:$0xff]   ;;  %v2394_v21 = vld [vmem:[#allocation5 + $0x380] ss:$40 sps:$4 sm:$0xff]  }
  0x51   :  { %1614 = vmatpush1.bf16.msra.mxu0 %v2315_v28  ;;  %1574 = vmatprep.subr.bf16.mxu1 %v2316_v29  ;;  %v2396_v19 = vld [vmem:[#allocation5 + $0x384] ss:$40 sps:$4 sm:$0xff]   ;;  %v2391_v20 = vld [vmem:[#allocation5 + $0xf8] ss:$40 sps:$4 sm:$0xff]   ;;  %v2402_v23 = vld [vmem:[#allocation5 + $0x3d4] ss:$40 sps:$4 sm:$0xff]  }
  0x52   :  { %1615 = vmatprep.subr.bf16.mxu0 %v2318_v30  ;;  %v2399_v22 = vld [vmem:[#allocation5 + $0x14c] ss:$40 sps:$4 sm:$0xff]   ;;  %v2397_v24 = vld [vmem:[#allocation5 + $0x148] ss:$40 sps:$4 sm:$0xff]   ;;  %v2405_v26 = vld [vmem:[#allocation5 + $0x19c] ss:$40 sps:$4 sm:$0xff]  }
  0x53   :  { %v2400_v25 = vld [vmem:[#allocation5 + $0x3d0] ss:$40 sps:$4 sm:$0xff]   ;;  %v2408_v27 = vld [vmem:[#allocation5 + $0x424] ss:$40 sps:$4 sm:$0xff]   ;;  %v2406_v29 = vld [vmem:[#allocation5 + $0x420] ss:$40 sps:$4 sm:$0xff]  }
  0x54   :  { %1575 = vmatpush1.bf16.msra.mxu1 %v2320_v31  ;;  %v2403_v28 = vld [vmem:[#allocation5 + $0x198] ss:$40 sps:$4 sm:$0xff]   ;;  %v2411_v30 = vld [vmem:[#allocation5 + $0x1ec] ss:$40 sps:$4 sm:$0xff]   ;;  %v2433_v49 = vld [vmem:[#allocation5 + $0x328] ss:$40 sps:$4 sm:$0xff]  }
  0x55   :  { %1616 = vmatpush1.bf16.msra.mxu0 %v2321_v32  ;;  %1576 = vmatprep.subr.bf16.mxu1 %v2322_v33  ;;  %v2414_v31 = vld [vmem:[#allocation5 + $0x474] ss:$40 sps:$4 sm:$0xff]   ;;  %v2409_v32 = vld [vmem:[#allocation5 + $0x1e8] ss:$40 sps:$4 sm:$0xff]   ;;  %s2738_s2 = smov [#allocation8]  }
  0x56   :  { %1724 = vmatprep.subr.bf16.mxu0 %v2326_v34  ;;  %v2412_v33 = vld [vmem:[#allocation5 + $0x470] ss:$40 sps:$4 sm:$0xff]   ;;  %v2417_v34 = vld [vmem:[#allocation5 + $0x23c] ss:$40 sps:$4 sm:$0xff]   ;;  %s1986_s21 = sshll.u32 %s2738_s2, 4  ;;  %s1987_s21 = int_to_ptr.vmem [resolvable:$true] %s1986_s21 }
  0x57   :  { %s2704_s22 = scalar_lea.vmem %s1987_s21, 1280  ;;  %p2709_p11 = scmp.lt.s32.totalorder %s1987_s21, %s1987_s21 }
  0x58   :  { %1634 = vmatmul.mubr.bf16.vlgmr.msra.gmra.mrb[0].mxu0 %v2796_v36  ;;  %1577 = vmatpush1.bf16.msra.mxu1 %v2327_v37  ;;  %v2415_v37 = vld [vmem:[#allocation5 + $0x238] ss:$40 sps:$4 sm:$0xff]   ;;  %p2705_p10 = scmp.ne.s32.totalorder %s1987_s21, %s2704_s22  ;;  %p2710_p12 = scmp.lt.s32.totalorder %s2704_s22, %s2704_s22 }
  0x59   :  { %1725 = vmatpush1.bf16.msra.mxu0 %v2324_v35  ;;  %1578 = vmatprep.subr.bf16.mxu1 %v2329_v38  ;;  %v2420_v35 = vld [vmem:[#allocation5 + $0x4c4] ss:$40 sps:$4 sm:$0xff]   ;;  %v2418_v38 = vld [vmem:[#allocation5 + $0x4c0] ss:$40 sps:$4 sm:$0xff]  }
  0x5a   :  { %1726 = vmatprep.subr.bf16.mxu0 %v2333_v39  ;;  %1756 = vmatprep.mubr.bf16.mxu0 %v2799_v52  ;;  %v2423_v39 = vld [vmem:[#allocation5 + $0x28c] ss:$40 sps:$4 sm:$0xff]   ;;  %p2711_p13 = por %p2710_p12, %p2709_p11 }
  0x5c   :  { %1579 = vmatpush1.bf16.msra.mxu1 %v2334_v41  ;;  %v2421_v41 = vld [vmem:[#allocation5 + $0x288] ss:$40 sps:$4 sm:$0xff]   ;;  %p2712_p0 = pnand %p2711_p13, %p2705_p10 }
  0x5d   :  { %1727 = vmatpush1.bf16.msra.mxu0 %v2331_v40  ;;  %1580 = vmatprep.subr.bf16.mxu1 %v2335_v42  ;;  %v2426_v40 = vld [vmem:[#allocation5 + $0x514] ss:$40 sps:$4 sm:$0xff]   ;;  %v2424_v42 = vld [vmem:[#allocation5 + $0x510] ss:$40 sps:$4 sm:$0xff]  }
  0x5e   :  { %1728 = vmatprep.subr.bf16.mxu0 %v2339_v43  ;;  %v2429_v43 = vld [vmem:[#allocation5 + $0x2dc] ss:$40 sps:$4 sm:$0xff]  }
  0x60   :  { %1581 = vmatpush1.bf16.msra.mxu1 %v2340_v45  ;;  %v2427_v45 = vld [vmem:[#allocation5 + $0x2d8] ss:$40 sps:$4 sm:$0xff]  }
  0x61   :  { %1729 = vmatpush1.bf16.msra.mxu0 %v2337_v44  ;;  %1582 = vmatprep.subr.bf16.mxu1 %v2341_v46  ;;  %v2432_v44 = vld [vmem:[#allocation5 + $0x564] ss:$40 sps:$4 sm:$0xff]   ;;  %v2430_v46 = vld [vmem:[#allocation5 + $0x560] ss:$40 sps:$4 sm:$0xff]  }
  0x62   :  { %1730 = vmatprep.subr.bf16.mxu0 %v2345_v47  ;;  %v2435_v47 = vld [vmem:[#allocation5 + $0x32c] ss:$40 sps:$4 sm:$0xff]  }
  0x64   :  { %1583 = vmatpush1.bf16.msra.mxu1 %v2346_v50  ;;  %v2436_v50 = vld [vmem:[#allocation5 + $0x5b0] ss:$40 sps:$4 sm:$0xff]  }
  0x65   :  { %1731 = vmatpush1.bf16.msra.mxu0 %v2343_v48  ;;  %1584 = vmatprep.subr.bf16.mxu1 %v2347_v51  ;;  %v2438_v48 = vld [vmem:[#allocation5 + $0x5b4] ss:$40 sps:$4 sm:$0xff]  }
  0x66   :  { %1732 = vmatprep.subr.bf16.mxu0 %v2351_v53  ;;  %v2441_v51 = vld [vmem:[#allocation5 + $0x37c] ss:$40 sps:$4 sm:$0xff]  }
  0x67   :  { %v2444_v53 = vld [vmem:[#allocation5 + $0x604] ss:$40 sps:$4 sm:$0xff]  }
  0x68   :  { %1585 = vmatpush1.bf16.msra.mxu1 %v2352_v55  ;;  %v2442_v55 = vld [vmem:[#allocation5 + $0x600] ss:$40 sps:$4 sm:$0xff]  }
  0x69   :  { %1733 = vmatpush1.bf16.msra.mxu0 %v2349_v54  ;;  %1586 = vmatprep.subr.bf16.mxu1 %v2353_v56  ;;  %v2439_v54 = vld [vmem:[#allocation5 + $0x378] ss:$40 sps:$4 sm:$0xff]   ;;  %v2447_v56 = vld [vmem:[#allocation5 + $0x3cc] ss:$40 sps:$4 sm:$0xff]  }
  0x6a   :  { %1734 = vmatprep.subr.bf16.mxu0 %v2357_v57  ;;  %v2450_v57 = vld [vmem:[#allocation5 + $0x654] ss:$40 sps:$4 sm:$0xff]  }
  0x6c   :  { %1587 = vmatpush1.bf16.msra.mxu1 %v2358_v59  ;;  %v2448_v59 = vld [vmem:[#allocation5 + $0x650] ss:$40 sps:$4 sm:$0xff]  }
  0x6d   :  { %1735 = vmatpush1.bf16.msra.mxu0 %v2355_v58  ;;  %1588 = vmatprep.subr.bf16.mxu1 %v2359_v60  ;;  %v2445_v58 = vld [vmem:[#allocation5 + $0x3c8] ss:$40 sps:$4 sm:$0xff]   ;;  %v2453_v60 = vld [vmem:[#allocation5 + $0x41c] ss:$40 sps:$4 sm:$0xff]  }
  0x6e   :  { %1736 = vmatprep.subr.bf16.mxu0 %v2363_v61  ;;  %v2456_v61 = vld [vmem:[#allocation5 + $0x6a4] ss:$40 sps:$4 sm:$0xff]  }
  0x70   :  { %1589 = vmatpush1.bf16.msra.mxu1 %v2364_v63  ;;  %v2454_v63 = vld [vmem:[#allocation5 + $0x6a0] ss:$40 sps:$4 sm:$0xff]  }
  0x71   :  { %1737 = vmatpush1.bf16.msra.mxu0 %v2361_v62  ;;  %1590 = vmatprep.subr.bf16.mxu1 %v2365_v1  ;;  %v2451_v62 = vld [vmem:[#allocation5 + $0x418] ss:$40 sps:$4 sm:$0xff]   ;;  %v2459_v1 = vld [vmem:[#allocation5 + $0x46c] ss:$40 sps:$4 sm:$0xff]  }
  0x72   :  { %1738 = vmatprep.subr.bf16.mxu0 %v2369_v2  ;;  %v2462_v2 = vld [vmem:[#allocation5 + $0x6f4] ss:$40 sps:$4 sm:$0xff]  }
  0x74   :  { %1591 = vmatpush1.bf16.msra.mxu1 %v2370_v4  ;;  %v2460_v4 = vld [vmem:[#allocation5 + $0x6f0] ss:$40 sps:$4 sm:$0xff]  }
  0x75   :  { %1739 = vmatpush1.bf16.msra.mxu0 %v2367_v3  ;;  %1642 = vmatprep.subr.bf16.mxu1 %v2375_v5  ;;  %v2457_v3 = vld [vmem:[#allocation5 + $0x468] ss:$40 sps:$4 sm:$0xff]   ;;  %v2465_v5 = vld [vmem:[#allocation5 + $0x4bc] ss:$40 sps:$4 sm:$0xff]  }
  0x76   :  { %1740 = vmatprep.subr.bf16.mxu0 %v2378_v6  ;;  %v2468_v6 = vld [vmem:[#allocation5 + $0x744] ss:$40 sps:$4 sm:$0xff]  }
  0x77   :  { %1593 = vmatmul.mubr.bf16.vlgmr.msra.gmra.mrb[0].mxu1 %v2803_v7 }
  0x78   :  { %1643 = vmatpush1.bf16.msra.mxu1 %v2373_v8  ;;  %1674 = vmatprep.mubr.bf16.mxu1 %v2799_v52  ;;  %v2463_v8 = vld [vmem:[#allocation5 + $0x4b8] ss:$40 sps:$4 sm:$0xff]  }
  0x79   :  { %1741 = vmatpush1.bf16.msra.mxu0 %v2376_v9  ;;  %1644 = vmatprep.subr.bf16.mxu1 %v2381_v10  ;;  %v2466_v9 = vld [vmem:[#allocation5 + $0x740] ss:$40 sps:$4 sm:$0xff]   ;;  %v2471_v10 = vld [vmem:[#allocation5 + $0x50c] ss:$40 sps:$4 sm:$0xff]  }
  0x7a   :  { %1742 = vmatprep.subr.bf16.mxu0 %v2384_v11  ;;  %v2474_v11 = vld [vmem:[#allocation5 + $0x24] ss:$40 sps:$4 sm:$0xff]  }
  0x7c   :  { %1645 = vmatpush1.bf16.msra.mxu1 %v2379_v12  ;;  %v2469_v12 = vld [vmem:[#allocation5 + $0x508] ss:$40 sps:$4 sm:$0xff]  }
  0x7d   :  { %1743 = vmatpush1.bf16.msra.mxu0 %v2382_v13  ;;  %1646 = vmatprep.subr.bf16.mxu1 %v2387_v14  ;;  %v2472_v13 = vld [vmem:[#allocation5 + $0x20] ss:$40 sps:$4 sm:$0xff]   ;;  %v2477_v14 = vld [vmem:[#allocation5 + $0x55c] ss:$40 sps:$4 sm:$0xff]  }
  0x7e   :  { %1744 = vmatprep.subr.bf16.mxu0 %v2390_v15  ;;  %v2480_v15 = vld [vmem:[#allocation5 + $0x74] ss:$40 sps:$4 sm:$0xff]  }
  0x80   :  { %1647 = vmatpush1.bf16.msra.mxu1 %v2385_v16  ;;  %v2475_v16 = vld [vmem:[#allocation5 + $0x558] ss:$40 sps:$4 sm:$0xff]  }
  0x81   :  { %1745 = vmatpush1.bf16.msra.mxu0 %v2388_v17  ;;  %1648 = vmatprep.subr.bf16.mxu1 %v2393_v18  ;;  %v2478_v17 = vld [vmem:[#allocation5 + $0x70] ss:$40 sps:$4 sm:$0xff]   ;;  %v2483_v18 = vld [vmem:[#allocation5 + $0x5ac] ss:$40 sps:$4 sm:$0xff]  }
  0x82   :  { %1746 = vmatprep.subr.bf16.mxu0 %v2396_v19  ;;  %v2486_v19 = vld [vmem:[#allocation5 + $0xc4] ss:$40 sps:$4 sm:$0xff]  }
  0x84   :  { %1649 = vmatpush1.bf16.msra.mxu1 %v2391_v20  ;;  %v2481_v20 = vld [vmem:[#allocation5 + $0x5a8] ss:$40 sps:$4 sm:$0xff]  }
  0x85   :  { %1747 = vmatpush1.bf16.msra.mxu0 %v2394_v21  ;;  %1650 = vmatprep.subr.bf16.mxu1 %v2399_v22  ;;  %v2484_v21 = vld [vmem:[#allocation5 + $0xc0] ss:$40 sps:$4 sm:$0xff]   ;;  %v2489_v22 = vld [vmem:[#allocation5 + $0x5fc] ss:$40 sps:$4 sm:$0xff]  }
  0x86   :  { %1748 = vmatprep.subr.bf16.mxu0 %v2402_v23  ;;  %v2492_v23 = vld [vmem:[#allocation5 + $0x114] ss:$40 sps:$4 sm:$0xff]  }
  0x88   :  { %1651 = vmatpush1.bf16.msra.mxu1 %v2397_v24  ;;  %v2487_v24 = vld [vmem:[#allocation5 + $0x5f8] ss:$40 sps:$4 sm:$0xff]  }
  0x89   :  { %1749 = vmatpush1.bf16.msra.mxu0 %v2400_v25  ;;  %1652 = vmatprep.subr.bf16.mxu1 %v2405_v26  ;;  %v2490_v25 = vld [vmem:[#allocation5 + $0x110] ss:$40 sps:$4 sm:$0xff]   ;;  %v2495_v26 = vld [vmem:[#allocation5 + $0x64c] ss:$40 sps:$4 sm:$0xff]  }
  0x8a   :  { %1750 = vmatprep.subr.bf16.mxu0 %v2408_v27  ;;  %v2498_v27 = vld [vmem:[#allocation5 + $0x164] ss:$40 sps:$4 sm:$0xff]  }
  0x8c   :  { %1653 = vmatpush1.bf16.msra.mxu1 %v2403_v28  ;;  %v2493_v28 = vld [vmem:[#allocation5 + $0x648] ss:$40 sps:$4 sm:$0xff]  }
  0x8d   :  { %1751 = vmatpush1.bf16.msra.mxu0 %v2406_v29  ;;  %1654 = vmatprep.subr.bf16.mxu1 %v2411_v30  ;;  %v2496_v29 = vld [vmem:[#allocation5 + $0x160] ss:$40 sps:$4 sm:$0xff]   ;;  %v2501_v30 = vld [vmem:[#allocation5 + $0x69c] ss:$40 sps:$4 sm:$0xff]  }
  0x8e   :  { %1752 = vmatprep.subr.bf16.mxu0 %v2414_v31  ;;  %v2504_v31 = vld [vmem:[#allocation5 + $0x1b4] ss:$40 sps:$4 sm:$0xff]  }
  0x90   :  { %1655 = vmatpush1.bf16.msra.mxu1 %v2409_v32  ;;  %v2499_v32 = vld [vmem:[#allocation5 + $0x698] ss:$40 sps:$4 sm:$0xff]  }
  0x91   :  { %1753 = vmatpush1.bf16.msra.mxu0 %v2412_v33  ;;  %1656 = vmatprep.subr.bf16.mxu1 %v2417_v34  ;;  %v2502_v33 = vld [vmem:[#allocation5 + $0x1b0] ss:$40 sps:$4 sm:$0xff]   ;;  %v2507_v34 = vld [vmem:[#allocation5 + $0x6ec] ss:$40 sps:$4 sm:$0xff]  }
  0x92   :  { %1754 = vmatprep.subr.bf16.mxu0 %v2420_v35  ;;  %v2510_v35 = vld [vmem:[#allocation5 + $0x204] ss:$40 sps:$4 sm:$0xff]  }
  0x94   :  { %1657 = vmatpush1.bf16.msra.mxu1 %v2415_v37  ;;  %v2505_v37 = vld [vmem:[#allocation5 + $0x6e8] ss:$40 sps:$4 sm:$0xff]  }
  0x95   :  { %1755 = vmatpush1.bf16.msra.mxu0 %v2418_v38  ;;  %1658 = vmatprep.subr.bf16.mxu1 %v2423_v39  ;;  %v2508_v38 = vld [vmem:[#allocation5 + $0x200] ss:$40 sps:$4 sm:$0xff]   ;;  %v2513_v39 = vld [vmem:[#allocation5 + $0x73c] ss:$40 sps:$4 sm:$0xff]  }
  0x96   :  { %1765 = vmatprep.subr.bf16.mxu0 %v2426_v40  ;;  %v2516_v40 = vld [vmem:[#allocation5 + $0x254] ss:$40 sps:$4 sm:$0xff]  }
  0x98   :  { %1757 = vmatmul.mubr.bf16.vlgmr.msra.gmra.mrb[4].mxu0 %v2803_v7  ;;  %1659 = vmatpush1.bf16.msra.mxu1 %v2421_v41  ;;  %v2511_v41 = vld [vmem:[#allocation5 + $0x738] ss:$40 sps:$4 sm:$0xff]  }
  0x99   :  { %1766 = vmatpush1.bf16.msra.mxu0 %v2424_v42  ;;  %1660 = vmatprep.subr.bf16.mxu1 %v2429_v43  ;;  %v2514_v42 = vld [vmem:[#allocation5 + $0x250] ss:$40 sps:$4 sm:$0xff]   ;;  %v2519_v43 = vld [vmem:[#allocation5 + $0x1c] ss:$40 sps:$4 sm:$0xff]  }
  0x9a   :  { %1767 = vmatprep.subr.bf16.mxu0 %v2432_v44  ;;  %1797 = vmatprep.mubr.bf16.mxu0 %v2737_v0  ;;  %v2522_v44 = vld [vmem:[#allocation5 + $0x2a4] ss:$40 sps:$4 sm:$0xff]  }
  0x9c   :  { %1661 = vmatpush1.bf16.msra.mxu1 %v2427_v45  ;;  %v2517_v45 = vld [vmem:[#allocation5 + $0x18] ss:$40 sps:$4 sm:$0xff]  }
  0x9d   :  { %1768 = vmatpush1.bf16.msra.mxu0 %v2430_v46  ;;  %1662 = vmatprep.subr.bf16.mxu1 %v2435_v47  ;;  %v2520_v46 = vld [vmem:[#allocation5 + $0x2a0] ss:$40 sps:$4 sm:$0xff]   ;;  %v2525_v47 = vld [vmem:[#allocation5 + $0x6c] ss:$40 sps:$4 sm:$0xff]  }
  0x9e   :  { %1769 = vmatprep.subr.bf16.mxu0 %v2438_v48  ;;  %v2528_v48 = vld [vmem:[#allocation5 + $0x2f4] ss:$40 sps:$4 sm:$0xff]  }
  0xa0   :  { %1663 = vmatpush1.bf16.msra.mxu1 %v2433_v49  ;;  %v2523_v49 = vld [vmem:[#allocation5 + $0x68] ss:$40 sps:$4 sm:$0xff]  }
  0xa1   :  { %1770 = vmatpush1.bf16.msra.mxu0 %v2436_v50  ;;  %1664 = vmatprep.subr.bf16.mxu1 %v2441_v51  ;;  %v2526_v50 = vld [vmem:[#allocation5 + $0x2f0] ss:$40 sps:$4 sm:$0xff]   ;;  %v2531_v51 = vld [vmem:[#allocation5 + $0xbc] ss:$40 sps:$4 sm:$0xff]  }
  0xa2   :  { %1771 = vmatprep.subr.bf16.mxu0 %v2444_v53  ;;  %v2534_v53 = vld [vmem:[#allocation5 + $0x344] ss:$40 sps:$4 sm:$0xff]  }
  0xa4   :  { %1665 = vmatpush1.bf16.msra.mxu1 %v2439_v54  ;;  %v2529_v54 = vld [vmem:[#allocation5 + $0xb8] ss:$40 sps:$4 sm:$0xff]  }
  0xa5   :  { %1772 = vmatpush1.bf16.msra.mxu0 %v2442_v55  ;;  %1666 = vmatprep.subr.bf16.mxu1 %v2447_v56  ;;  %v2532_v55 = vld [vmem:[#allocation5 + $0x340] ss:$40 sps:$4 sm:$0xff]   ;;  %v2537_v56 = vld [vmem:[#allocation5 + $0x10c] ss:$40 sps:$4 sm:$0xff]  }
  0xa6   :  { %1773 = vmatprep.subr.bf16.mxu0 %v2450_v57  ;;  %v2540_v57 = vld [vmem:[#allocation5 + $0x394] ss:$40 sps:$4 sm:$0xff]  }
  0xa8   :  { %1667 = vmatpush1.bf16.msra.mxu1 %v2445_v58  ;;  %v2538_v58 = vld [vmem:[#allocation5 + $0x390] ss:$40 sps:$4 sm:$0xff]  }
  0xa9   :  { %1774 = vmatpush1.bf16.msra.mxu0 %v2448_v59  ;;  %1668 = vmatprep.subr.bf16.mxu1 %v2453_v60  ;;  %v2543_v59 = vld [vmem:[#allocation5 + $0x15c] ss:$40 sps:$4 sm:$0xff]  }
  0xaa   :  { %1775 = vmatprep.subr.bf16.mxu0 %v2456_v61  ;;  %v2546_v60 = vld [vmem:[#allocation5 + $0x3e4] ss:$40 sps:$4 sm:$0xff]   ;;  %v2541_v61 = vld [vmem:[#allocation5 + $0x158] ss:$40 sps:$4 sm:$0xff]  }
  0xac   :  { %1669 = vmatpush1.bf16.msra.mxu1 %v2451_v62  ;;  %v2549_v62 = vld [vmem:[#allocation5 + $0x1ac] ss:$40 sps:$4 sm:$0xff]  }
  0xad   :  { %1776 = vmatpush1.bf16.msra.mxu0 %v2454_v63  ;;  %1670 = vmatprep.subr.bf16.mxu1 %v2459_v1  ;;  %v2552_v63 = vld [vmem:[#allocation5 + $0x434] ss:$40 sps:$4 sm:$0xff]   ;;  %v2547_v1 = vld [vmem:[#allocation5 + $0x1a8] ss:$40 sps:$4 sm:$0xff]  }
  0xae   :  { %1777 = vmatprep.subr.bf16.mxu0 %v2462_v2  ;;  %v2550_v2 = vld [vmem:[#allocation5 + $0x430] ss:$40 sps:$4 sm:$0xff]  }
  0xb0   :  { %1671 = vmatpush1.bf16.msra.mxu1 %v2457_v3  ;;  %v2555_v3 = vld [vmem:[#allocation5 + $0x1fc] ss:$40 sps:$4 sm:$0xff]  }
  0xb1   :  { %1778 = vmatpush1.bf16.msra.mxu0 %v2460_v4  ;;  %1672 = vmatprep.subr.bf16.mxu1 %v2465_v5  ;;  %v2558_v4 = vld [vmem:[#allocation5 + $0x484] ss:$40 sps:$4 sm:$0xff]   ;;  %v2553_v5 = vld [vmem:[#allocation5 + $0x1f8] ss:$40 sps:$4 sm:$0xff]  }
  0xb2   :  { %1779 = vmatprep.subr.bf16.mxu0 %v2468_v6  ;;  %v2556_v6 = vld [vmem:[#allocation5 + $0x480] ss:$40 sps:$4 sm:$0xff]  }
  0xb4   :  { %1673 = vmatpush1.bf16.msra.mxu1 %v2463_v8  ;;  %v2561_v8 = vld [vmem:[#allocation5 + $0x24c] ss:$40 sps:$4 sm:$0xff]  }
  0xb5   :  { %1780 = vmatpush1.bf16.msra.mxu0 %v2466_v9  ;;  %1683 = vmatprep.subr.bf16.mxu1 %v2471_v10  ;;  %v2564_v9 = vld [vmem:[#allocation5 + $0x4d4] ss:$40 sps:$4 sm:$0xff]   ;;  %v2559_v10 = vld [vmem:[#allocation5 + $0x248] ss:$40 sps:$4 sm:$0xff]  }
  0xb6   :  { %1888 = vmatprep.subr.bf16.mxu0 %v2474_v11  ;;  %v2562_v11 = vld [vmem:[#allocation5 + $0x4d0] ss:$40 sps:$4 sm:$0xff]  }
  0xb7   :  { %1675 = vmatmul.mubr.bf16.vlgmr.msra.gmra.mrb[4].mxu1 %v2803_v7 }
  0xb8   :  { %1798 = vmatmul.mubr.bf16.vlgmr.msra.gmra.mrb[4].mxu0 %v2796_v36  ;;  %1684 = vmatpush1.bf16.msra.mxu1 %v2469_v12  ;;  %v2567_v12 = vld [vmem:[#allocation5 + $0x29c] ss:$40 sps:$4 sm:$0xff]  }
  0xb9   :  { %1889 = vmatpush1.bf16.msra.mxu0 %v2472_v13  ;;  %1685 = vmatprep.subr.bf16.mxu1 %v2477_v14  ;;  %v2570_v13 = vld [vmem:[#allocation5 + $0x524] ss:$40 sps:$4 sm:$0xff]   ;;  %v2565_v14 = vld [vmem:[#allocation5 + $0x298] ss:$40 sps:$4 sm:$0xff]  }
  0xba   :  { %1890 = vmatprep.subr.bf16.mxu0 %v2480_v15  ;;  %1715 = vmatprep.mubr.bf16.mxu1 %v2737_v0  ;;  %v2568_v15 = vld [vmem:[#allocation5 + $0x520] ss:$40 sps:$4 sm:$0xff]  }
  0xbb   :  { %1920 = vmatprep.mubr.bf16.mxu0 %v2799_v52 }
  0xbc   :  { %1686 = vmatpush1.bf16.msra.mxu1 %v2475_v16  ;;  %v2573_v16 = vld [vmem:[#allocation5 + $0x2ec] ss:$40 sps:$4 sm:$0xff]  }
  0xbd   :  { %1891 = vmatpush1.bf16.msra.mxu0 %v2478_v17  ;;  %1687 = vmatprep.subr.bf16.mxu1 %v2483_v18  ;;  %v2576_v17 = vld [vmem:[#allocation5 + $0x574] ss:$40 sps:$4 sm:$0xff]   ;;  %v2571_v18 = vld [vmem:[#allocation5 + $0x2e8] ss:$40 sps:$4 sm:$0xff]  }
  0xbe   :  { %1892 = vmatprep.subr.bf16.mxu0 %v2486_v19  ;;  %v2574_v19 = vld [vmem:[#allocation5 + $0x570] ss:$40 sps:$4 sm:$0xff]  }
  0xc0   :  { %1688 = vmatpush1.bf16.msra.mxu1 %v2481_v20  ;;  %v2579_v20 = vld [vmem:[#allocation5 + $0x33c] ss:$40 sps:$4 sm:$0xff]  }
  0xc1   :  { %1893 = vmatpush1.bf16.msra.mxu0 %v2484_v21  ;;  %1689 = vmatprep.subr.bf16.mxu1 %v2489_v22  ;;  %v2582_v21 = vld [vmem:[#allocation5 + $0x5c4] ss:$40 sps:$4 sm:$0xff]   ;;  %v2577_v22 = vld [vmem:[#allocation5 + $0x338] ss:$40 sps:$4 sm:$0xff]  }
  0xc2   :  { %1894 = vmatprep.subr.bf16.mxu0 %v2492_v23  ;;  %v2580_v23 = vld [vmem:[#allocation5 + $0x5c0] ss:$40 sps:$4 sm:$0xff]  }
  0xc4   :  { %1690 = vmatpush1.bf16.msra.mxu1 %v2487_v24  ;;  %v2585_v24 = vld [vmem:[#allocation5 + $0x38c] ss:$40 sps:$4 sm:$0xff]  }
  0xc5   :  { %1895 = vmatpush1.bf16.msra.mxu0 %v2490_v25  ;;  %1691 = vmatprep.subr.bf16.mxu1 %v2495_v26  ;;  %v2588_v25 = vld [vmem:[#allocation5 + $0x614] ss:$40 sps:$4 sm:$0xff]   ;;  %v2583_v26 = vld [vmem:[#allocation5 + $0x388] ss:$40 sps:$4 sm:$0xff]  }
  0xc6   :  { %1896 = vmatprep.subr.bf16.mxu0 %v2498_v27  ;;  %v2586_v27 = vld [vmem:[#allocation5 + $0x610] ss:$40 sps:$4 sm:$0xff]  }
  0xc8   :  { %1692 = vmatpush1.bf16.msra.mxu1 %v2493_v28  ;;  %v2591_v28 = vld [vmem:[#allocation5 + $0x3dc] ss:$40 sps:$4 sm:$0xff]  }
  0xc9   :  { %1897 = vmatpush1.bf16.msra.mxu0 %v2496_v29  ;;  %1693 = vmatprep.subr.bf16.mxu1 %v2501_v30  ;;  %v2594_v29 = vld [vmem:[#allocation5 + $0x664] ss:$40 sps:$4 sm:$0xff]   ;;  %v2589_v30 = vld [vmem:[#allocation5 + $0x3d8] ss:$40 sps:$4 sm:$0xff]  }
  0xca   :  { %1898 = vmatprep.subr.bf16.mxu0 %v2504_v31  ;;  %v2592_v31 = vld [vmem:[#allocation5 + $0x660] ss:$40 sps:$4 sm:$0xff]  }
  0xcc   :  { %1694 = vmatpush1.bf16.msra.mxu1 %v2499_v32  ;;  %v2597_v32 = vld [vmem:[#allocation5 + $0x42c] ss:$40 sps:$4 sm:$0xff]  }
  0xcd   :  { %1899 = vmatpush1.bf16.msra.mxu0 %v2502_v33  ;;  %1695 = vmatprep.subr.bf16.mxu1 %v2507_v34  ;;  %v2600_v33 = vld [vmem:[#allocation5 + $0x6b4] ss:$40 sps:$4 sm:$0xff]   ;;  %v2595_v34 = vld [vmem:[#allocation5 + $0x428] ss:$40 sps:$4 sm:$0xff]  }
  0xce   :  { %1900 = vmatprep.subr.bf16.mxu0 %v2510_v35  ;;  %v2598_v35 = vld [vmem:[#allocation5 + $0x6b0] ss:$40 sps:$4 sm:$0xff]  }
  0xd0   :  { %1696 = vmatpush1.bf16.msra.mxu1 %v2505_v37  ;;  %v2603_v37 = vld [vmem:[#allocation5 + $0x47c] ss:$40 sps:$4 sm:$0xff]  }
  0xd1   :  { %1901 = vmatpush1.bf16.msra.mxu0 %v2508_v38  ;;  %1697 = vmatprep.subr.bf16.mxu1 %v2513_v39  ;;  %v2606_v38 = vld [vmem:[#allocation5 + $0x704] ss:$40 sps:$4 sm:$0xff]   ;;  %v2601_v39 = vld [vmem:[#allocation5 + $0x478] ss:$40 sps:$4 sm:$0xff]  }
  0xd2   :  { %1902 = vmatprep.subr.bf16.mxu0 %v2516_v40  ;;  %v2604_v40 = vld [vmem:[#allocation5 + $0x700] ss:$40 sps:$4 sm:$0xff]  }
  0xd4   :  { %1698 = vmatpush1.bf16.msra.mxu1 %v2511_v41  ;;  %v2609_v41 = vld [vmem:[#allocation5 + $0x4cc] ss:$40 sps:$4 sm:$0xff]  }
  0xd5   :  { %1903 = vmatpush1.bf16.msra.mxu0 %v2514_v42  ;;  %1806 = vmatprep.subr.bf16.mxu1 %v2519_v43  ;;  %v2612_v42 = vld [vmem:[#allocation5 + $0x754] ss:$40 sps:$4 sm:$0xff]   ;;  %v2607_v43 = vld [vmem:[#allocation5 + $0x4c8] ss:$40 sps:$4 sm:$0xff]  }
  0xd6   :  { %1904 = vmatprep.subr.bf16.mxu0 %v2522_v44  ;;  %v2610_v44 = vld [vmem:[#allocation5 + $0x750] ss:$40 sps:$4 sm:$0xff]  }
  0xd7   :  { %1716 = vmatmul.mubr.bf16.vlgmr.msra.gmra.mrb[4].mxu1 %v2796_v36  ;;  %v2535_v36 = vld [vmem:[#allocation5 + $0x108] ss:$40 sps:$4 sm:$0xff]  }
  0xd8   :  { %1807 = vmatpush1.bf16.msra.mxu1 %v2517_v45  ;;  %1838 = vmatprep.mubr.bf16.mxu1 %v2799_v52  ;;  %v2544_v52 = vld [vmem:[#allocation5 + $0x3e0] ss:$40 sps:$4 sm:$0xff]   ;;  %v2615_v45 = vld [vmem:[#allocation5 + $0x51c] ss:$40 sps:$4 sm:$0xff]  }
  0xd9   :  { %1905 = vmatpush1.bf16.msra.mxu0 %v2520_v46  ;;  %1808 = vmatprep.subr.bf16.mxu1 %v2525_v47  ;;  %v2613_v46 = vld [vmem:[#allocation5 + $0x518] ss:$40 sps:$4 sm:$0xff]   ;;  %v2618_v47 = vld [vmem:[#allocation5 + $0x56c] ss:$40 sps:$4 sm:$0xff]  }
  0xda   :  { %1906 = vmatprep.subr.bf16.mxu0 %v2528_v48  ;;  %v2637_v48 = vld [vmem:[#allocation2 + $0x8] ss:$0 sps:$4 sm:$0xff]  }
  0xdc   :  { %1809 = vmatpush1.bf16.msra.mxu1 %v2523_v49  ;;  %v2616_v49 = vld [vmem:[#allocation5 + $0x568] ss:$40 sps:$4 sm:$0xff]  }
  0xdd   :  { %1907 = vmatpush1.bf16.msra.mxu0 %v2526_v50  ;;  %1810 = vmatprep.subr.bf16.mxu1 %v2531_v51  ;;  %v2621_v50 = vld [vmem:[#allocation5 + $0x5bc] ss:$40 sps:$4 sm:$0xff]   ;;  %v2619_v51 = vld [vmem:[#allocation5 + $0x5b8] ss:$40 sps:$4 sm:$0xff]  }
  0xde   :  { %1908 = vmatprep.subr.bf16.mxu0 %v2534_v53  ;;  %v2624_v53 = vld [vmem:[#allocation5 + $0x60c] ss:$40 sps:$4 sm:$0xff]  }
  0xe0   :  { %1811 = vmatpush1.bf16.msra.mxu1 %v2529_v54  ;;  %v2622_v54 = vld [vmem:[#allocation5 + $0x608] ss:$40 sps:$4 sm:$0xff]  }
  0xe1   :  { %1909 = vmatpush1.bf16.msra.mxu0 %v2532_v55  ;;  %1812 = vmatprep.subr.bf16.mxu1 %v2537_v56  ;;  %v2627_v55 = vld [vmem:[#allocation5 + $0x65c] ss:$40 sps:$4 sm:$0xff]   ;;  %v2625_v56 = vld [vmem:[#allocation5 + $0x658] ss:$40 sps:$4 sm:$0xff]  }
  0xe2   :  { %1910 = vmatprep.subr.bf16.mxu0 %v2540_v57  ;;  %v2630_v57 = vld [vmem:[#allocation5 + $0x6ac] ss:$40 sps:$4 sm:$0xff]  }
  0xe4   :  { %1813 = vmatpush1.bf16.msra.mxu1 %v2535_v36  ;;  %v2633_v36 = vld [vmem:[#allocation5 + $0x6fc] ss:$40 sps:$4 sm:$0xff]  }
  0xe5   :  { %1911 = vmatpush1.bf16.msra.mxu0 %v2538_v58  ;;  %1814 = vmatprep.subr.bf16.mxu1 %v2543_v59  ;;  %v2631_v59 = vld [vmem:[#allocation5 + $0x6f8] ss:$40 sps:$4 sm:$0xff]  }
  0xe6   :  { %1912 = vmatprep.subr.bf16.mxu0 %v2546_v60 }
  0xe8   :  { %1815 = vmatpush1.bf16.msra.mxu1 %v2541_v61  ;;  %v2636_v61 = vld [vmem:[#allocation5 + $0x74c] ss:$40 sps:$4 sm:$0xff]  }
  0xe9   :  { %1913 = vmatpush1.bf16.msra.mxu0 %v2544_v52  ;;  %1816 = vmatprep.subr.bf16.mxu1 %v2549_v62  ;;  %v2634_v62 = vld [vmem:[#allocation5 + $0x748] ss:$40 sps:$4 sm:$0xff]  }
  0xea   :  { %1914 = vmatprep.subr.bf16.mxu0 %v2552_v63  ;;  %v299_v63 = vlaneseq }
  0xec   :  { %1817 = vmatpush1.bf16.msra.mxu1 %v2547_v1  ;;  %v300_v1 = vshrl.u32 %v299_v63, 7 }
  0xed   :  { %1915 = vmatpush1.bf16.msra.mxu0 %v2550_v2  ;;  %1818 = vmatprep.subr.bf16.mxu1 %v2555_v3  ;;  %v295_v3 = vld [vmem:[#allocation7] sm:$0xff] }
  0xee   :  { %1916 = vmatprep.subr.bf16.mxu0 %v2558_v4  ;;  %v301_v2 = vsub.s32 0, %v300_v1  ;;  %v305_v4 = vsub.s32 1, %v300_v1 }
  0xf0   :  { %1819 = vmatpush1.bf16.msra.mxu1 %v2553_v5  ;;  %v302_v5 = vrot.slane %v295_v3, %v301_v2 }
  0xf1   :  { %1917 = vmatpush1.bf16.msra.mxu0 %v2556_v6  ;;  %1820 = vmatprep.subr.bf16.mxu1 %v2561_v8  ;;  %v306_v6 = vrot.slane %v295_v3, %v305_v4 }
  0xf2   :  { %1918 = vmatprep.subr.bf16.mxu0 %v2564_v9 }
  0xf4   :  { %1821 = vmatpush1.bf16.msra.mxu1 %v2559_v10 }
  0xf5   :  { %1919 = vmatpush1.bf16.msra.mxu0 %v2562_v11  ;;  %1822 = vmatprep.subr.bf16.mxu1 %v2567_v12 }
  0xf6   :  { %1929 = vmatprep.subr.bf16.mxu0 %v2570_v13 }
  0xf8   :  { %1921 = vmatmul.mubr.bf16.vlgmr.msra.gmra.mrb[8].mxu0 %v2803_v7  ;;  %1823 = vmatpush1.bf16.msra.mxu1 %v2565_v14 }
  0xf9   :  { %1930 = vmatpush1.bf16.msra.mxu0 %v2568_v15  ;;  %1824 = vmatprep.subr.bf16.mxu1 %v2573_v16  ;;  %v317_v16 = vsub.s32 4, %v300_v1 }
  0xfa   :  { %1931 = vmatprep.subr.bf16.mxu0 %v2576_v17  ;;  %1961 = vmatprep.mubr.bf16.mxu0 %v2737_v0  ;;  %v321_v17 = vsub.s32 5, %v300_v1 }
  0xfc   :  { %1825 = vmatpush1.bf16.msra.mxu1 %v2571_v18  ;;  %v318_v18 = vrot.slane %v295_v3, %v317_v16 }
  0xfd   :  { %1932 = vmatpush1.bf16.msra.mxu0 %v2574_v19  ;;  %1826 = vmatprep.subr.bf16.mxu1 %v2579_v20  ;;  %v322_v19 = vrot.slane %v295_v3, %v321_v17 }
  0xfe   :  { %1933 = vmatprep.subr.bf16.mxu0 %v2582_v21 }
 0x100   :  { %1827 = vmatpush1.bf16.msra.mxu1 %v2577_v22 }
 0x101   :  { %1934 = vmatpush1.bf16.msra.mxu0 %v2580_v23  ;;  %1828 = vmatprep.subr.bf16.mxu1 %v2585_v24 }
 0x102   :  { %1935 = vmatprep.subr.bf16.mxu0 %v2588_v25 }
 0x104   :  { %1829 = vmatpush1.bf16.msra.mxu1 %v2583_v26  ;;  %v309_v26 = vsub.s32 2, %v300_v1 }
 0x105   :  { %1936 = vmatpush1.bf16.msra.mxu0 %v2586_v27  ;;  %1830 = vmatprep.subr.bf16.mxu1 %v2591_v28  ;;  %v313_v27 = vsub.s32 3, %v300_v1 }
 0x106   :  { %1937 = vmatprep.subr.bf16.mxu0 %v2594_v29  ;;  %v310_v28 = vrot.slane %v295_v3, %v309_v26 }
 0x107   :  { %v314_v29 = vrot.slane %v295_v3, %v313_v27 }
 0x108   :  { %1831 = vmatpush1.bf16.msra.mxu1 %v2589_v30 }
 0x109   :  { %1938 = vmatpush1.bf16.msra.mxu0 %v2592_v31  ;;  %1832 = vmatprep.subr.bf16.mxu1 %v2597_v32 }
 0x10a   :  { %1939 = vmatprep.subr.bf16.mxu0 %v2600_v33 }
 0x10c   :  { %1833 = vmatpush1.bf16.msra.mxu1 %v2595_v34 }
 0x10d   :  { %1940 = vmatpush1.bf16.msra.mxu0 %v2598_v35  ;;  %1834 = vmatprep.subr.bf16.mxu1 %v2603_v37  ;;  %v296_v37 = vld [vmem:[#allocation7 + $0x8] sm:$0x3] }
 0x10e   :  { %1941 = vmatprep.subr.bf16.mxu0 %v2606_v38  ;;  %v334_v38 = vrot.slane %v296_v37, %v301_v2 }
 0x110   :  { %1835 = vmatpush1.bf16.msra.mxu1 %v2601_v39  ;;  %v338_v39 = vrot.slane %v296_v37, %v305_v4 }
 0x111   :  { %1942 = vmatpush1.bf16.msra.mxu0 %v2604_v40  ;;  %1836 = vmatprep.subr.bf16.mxu1 %v2609_v41 }
 0x112   :  { %1943 = vmatprep.subr.bf16.mxu0 %v2612_v42 }
 0x114   :  { %1837 = vmatpush1.bf16.msra.mxu1 %v2607_v43 }
 0x115   :  { %1944 = vmatpush1.bf16.msra.mxu0 %v2610_v44  ;;  %1847 = vmatprep.subr.bf16.mxu1 %v2615_v45 }
 0x117   :  { %1839 = vmatmul.mubr.bf16.vlgmr.msra.gmra.mrb[8].mxu1 %v2803_v7  ;;  %v2628_v7 = vld [vmem:[#allocation5 + $0x6a8] ss:$40 sps:$4 sm:$0xff]  }
 0x118   :  { %1962 = vmatmul.mubr.bf16.vlgmr.msra.gmra.mrb[8].mxu0 %v2637_v48  ;;  %1848 = vmatpush1.bf16.msra.mxu1 %v2613_v46  ;;  %v325_v46 = vsub.s32 6, %v300_v1 }
 0x119   :  { %1879 = vmatprep.mubr.bf16.mxu1 %v2737_v0  ;;  %1849 = vmatprep.subr.bf16.mxu1 %v2618_v47  ;;  %v329_v47 = vsub.s32 7, %v300_v1 }
 0x11c   :  { %1850 = vmatpush1.bf16.msra.mxu1 %v2616_v49  ;;  %v330_v49 = vrot.slane %v295_v3, %v329_v47 }
 0x11d   :  { %1851 = vmatprep.subr.bf16.mxu1 %v2621_v50 }
 0x120   :  { %1852 = vmatpush1.bf16.msra.mxu1 %v2619_v51 }
 0x121   :  { %1853 = vmatprep.subr.bf16.mxu1 %v2624_v53 }
 0x124   :  { %1854 = vmatpush1.bf16.msra.mxu1 %v2622_v54 }
 0x125   :  { %1855 = vmatprep.subr.bf16.mxu1 %v2627_v55 }
 0x128   :  { %1856 = vmatpush1.bf16.msra.mxu1 %v2625_v56 }
 0x129   :  { %1857 = vmatprep.subr.bf16.mxu1 %v2630_v57 }
 0x12b   :  { %v1635_v58 = vpop.f32.mrb[0].mxu0 }
 0x12c   :  { %v1637_v0 = vpop.f32.mrb[1].mxu0  ;;  %1858 = vmatpush1.bf16.msra.mxu1 %v2628_v7 }
 0x12d   :  { %v1639_v60 = vpop.f32.mrb[2].mxu0  ;;  %1859 = vmatprep.subr.bf16.mxu1 %v2633_v36 }
 0x12e   :  { %v1640_v52 = vpop.f32.mrb[3].mxu0 }
 0x130   :  { %1860 = vmatpush1.bf16.msra.mxu1 %v2631_v59 }
 0x131   :  { %1861 = vmatprep.subr.bf16.mxu1 %v2636_v61 }
 0x134   :  { %1862 = vmatpush1.bf16.msra.mxu1 %v2634_v62 }
 0x137   :  { %1880 = vmatmul.mubr.bf16.vlgmr.msra.gmra.mrb[8].mxu1 %v2637_v48  ;;  %v326_v48 = vrot.slane %v295_v3, %v325_v46 }
 0x14a   :  { %v1594_v8 = vpop.f32.mrb[0].mxu1 }
 0x14b   :  { %v1595_v9 = vadd.f32 %v1594_v8, %v302_v5  ;;  %v1596_v10 = vpop.f32.mrb[1].mxu1 }
 0x14c   :  { %v1597_v11 = vadd.f32 %v1596_v10, %v306_v6  ;;  %v1598_v12 = vpop.f32.mrb[2].mxu1 }
 0x14d   :  { %v1636_v13 = vadd.f32 %v1635_v58, %v1595_v9  ;;  %v1599_v14 = vpop.f32.mrb[3].mxu1 }
 0x14e   :  { %v1638_v15 = vadd.f32 %v1637_v0, %v1597_v11 }
 0x14f   :  { %1970 = vst [vmem:[#allocation8] sm:$0xff] %v1636_v13 }
 0x150   :  { %1971 = vst [vmem:[#allocation8 + $0x8] sm:$0xff] %v1638_v15 }
 0x18b   :  { %v1799_v20 = vpop.f32.mrb[4].mxu0 }
 0x18c   :  { %v2245_v21 = vadd.f32 %v1799_v20, %v318_v18  ;;  %v1801_v22 = vpop.f32.mrb[5].mxu0 }
 0x18d   :  { %v2246_v23 = vadd.f32 %v1801_v22, %v322_v19  ;;  %v1803_v24 = vpop.f32.mrb[6].mxu0 }
 0x18e   :  { %1974 = vst [vmem:[#allocation8 + $0x20] sm:$0xff] %v2245_v21  ;;  %v1804_v25 = vpop.f32.mrb[7].mxu0 }
 0x18f   :  { %1975 = vst [vmem:[#allocation8 + $0x28] sm:$0xff] %v2246_v23 }
 0x1aa   :  { %v1717_v30 = vpop.f32.mrb[4].mxu1 }
 0x1ab   :  { %v2243_v31 = vadd.f32 %v1717_v30, %v310_v28  ;;  %v1719_v32 = vpop.f32.mrb[5].mxu1 }
 0x1ac   :  { %v2244_v33 = vadd.f32 %v1719_v32, %v314_v29  ;;  %v1721_v34 = vpop.f32.mrb[6].mxu1 }
 0x1ad   :  { %1972 = vst [vmem:[#allocation8 + $0x10] sm:$0xff] %v2243_v31  ;;  %v1722_v35 = vpop.f32.mrb[7].mxu1 }
 0x1ae   :  { %1973 = vst [vmem:[#allocation8 + $0x18] sm:$0xff] %v2244_v33 }
 0x1eb   :  { %v1963_v40 = vpop.f32.mrb[8].mxu0 }
 0x1ec   :  { %v2249_v41 = vadd.f32 %v1963_v40, %v334_v38  ;;  %v1965_v42 = vpop.f32.mrb[9].mxu0 }
 0x1ed   :  { %v2250_v43 = vadd.f32 %v1965_v42, %v338_v39  ;;  %v1967_v44 = vpop.f32.mrb[10].mxu0 }
 0x1ee   :  { %1978 = vst [vmem:[#allocation8 + $0x40] sm:$0xff] %v2249_v41  ;;  %v1968_v45 = vpop.f32.mrb[11].mxu0 }
 0x1ef   :  { %1979 = vst [vmem:[#allocation8 + $0x48] sm:$0xff] %v2250_v43 }
 0x20a   :  { %v1881_v50 = vpop.f32.mrb[8].mxu1 }
 0x20b   :  { %v2247_v51 = vadd.f32 %v1881_v50, %v326_v48  ;;  %v1883_v53 = vpop.f32.mrb[9].mxu1 }
 0x20c   :  { %v2248_v54 = vadd.f32 %v1883_v53, %v330_v49  ;;  %v1885_v55 = vpop.f32.mrb[10].mxu1 }
 0x20d   :  { %1976 = vst [vmem:[#allocation8 + $0x30] sm:$0xff] %v2247_v51  ;;  %v1886_v56 = vpop.f32.mrb[11].mxu1 }
 0x20e   :  { %1977 = vst [vmem:[#allocation8 + $0x38] sm:$0xff] %v2248_v54 }
 0x20f   :  { %2715 = shalt.err (!%p2712_p0)
}
 0x210   :  { %s2716_s25 = scalar_lea.hbm %s2834_s3, 1280 }
 0x211   :  { %p2717_p1 = scmp.ne.s32.totalorder %s2834_s3, %s2716_s25  ;;  %p2720_p2 = scmp.lt.u32.totalorder %s2716_s25, %s2834_s3 }
 0x213   :  { %p2722_p3 = pnand %p2720_p2, %p2717_p1 }
 0x215   :  { %2725 = shalt.err (!%p2722_p3)
}
 0x216   :  { %1989 = dma.vmem_to_hbm [thread:$0]  %s1987_s21, 1280, %s2834_s3, [#allocation4]  }
 0x217   :  { %2730 = dma.done.wait [#allocation4], 1280  }
 0x218   :  { %2731 = vsyncadd [#allocation4], 4294966016 }
 0x219   :  { %1993 = vsyncpa [#allocation3], 1 }
 0x21a   :  { %1994 = vsyncpa [#allocation6], 1 }
 0x21b   :  { %1995 = vsyncpa [#allocation4], 1 }

</bundles_post_ra>
